<compile_context>
chip_gen: v7x
topology: tpu7x:2x2x1
jax: 0.10.0
libtpu: 0.0.40
codegen_flags: <defaults>
</compile_context>

<pallas_src>
import functools

import jax
import jax.numpy as jnp
from jax.experimental import pallas as pl
from jax.experimental.pallas import tpu as pltpu


def _ceil_to(v, m):
    return ((v + m - 1) // m) * m


def _vmem_capacity_bytes():
    try:
        info = pltpu.get_tpu_info()
        cap = getattr(info, "vmem_capacity_bytes", None)
        if cap:
            return int(cap)
    except Exception:
        pass
    return 64 << 20  # conservative fallback: v7x per-core VMEM


def _choose_tiling(n0, h_p, co_p, k_p, g_p):
    """Device-aware (tm, n_pad, a_resident, vmem_limit)."""
    vmem_cap = _vmem_capacity_bytes()
    budget = int(vmem_cap * 0.7)

    def fixed_bytes(n_pad):
        return (2 * n_pad * h_p * 2          # XW1 (bf16, double-buffered)
                + 2 * h_p * co_p * 2         # W2
                + 2 * co_p * k_p * 2         # W_fc
                + 2 * (h_p + co_p + k_p) * 4 # biases
                + n_pad * co_p * 2           # hw2 scratch (bf16)
                + g_p * co_p * 4             # pooled accumulator
                + 2 * g_p * k_p * 4)         # output block

    n_pad = _ceil_to(max(n0, 1), 128)

    # Prefer fully VMEM-resident A_hat: streams A from HBM once instead of twice.
    a_res_need = 2 * n_pad * n_pad * 2 + fixed_bytes(n_pad) + 2 * g_p * 512 * 2
    if a_res_need <= budget:
        tm = min(512, n_pad)
        while n_pad % tm:
            tm -= 128
        need = 2 * n_pad * n_pad * 2 + fixed_bytes(n_pad) + 2 * g_p * tm * 2
        a_resident = True
    else:
        a_resident = False
        tm, need = None, None
        for cand in (1024, 512, 256, 128):
            np_c = _ceil_to(n_pad, cand)
            need_c = 2 * cand * np_c * 2 + fixed_bytes(np_c) + 2 * g_p * cand * 2
            if need_c <= budget:
                tm, n_pad, need = cand, np_c, need_c
                break
        if tm is None:
            # TODO(synk): K-tile the A columns so per-step VMEM is O(1) in graph size.
            tm = 128
            n_pad = _ceil_to(n_pad, tm)
            need = 2 * tm * n_pad * 2 + fixed_bytes(n_pad) + 2 * g_p * tm * 2

    vmem_limit = int(min(max(int(1.25 * need), 16 << 20), int(0.9 * vmem_cap)))
    return tm, n_pad, a_resident, vmem_limit


# ----------------------------- fused Pallas kernel -----------------------------

def _fused_gcn_kernel(num_classes, tm, a_resident,
                      a_ref, xw1_ref, b1_ref, w2_ref, b2_ref,
                      p_ref, wfc_ref, bfc_ref, o_ref,
                      hw2_s, pooled_s):
    l = pl.program_id(0)               # 0 = conv1 (+ per-tile W2), 1 = conv2 + pool (+ head)
    i = pl.program_id(1)               # A_hat row tile
    last = pl.num_programs(1) - 1
    row0 = pl.multiple_of(i * tm, tm)

    def a_tile():
        if a_resident:                 # A fully VMEM-resident: slice rows in place
            return a_ref[pl.ds(row0, tm), :]
        return a_ref[...]              # streamed (tm, n_pad) row tile

    # ---- phase 0: h_tile = relu(A_tile @ XW1 + b1); hw2[rows] = h_tile @ W2
    @pl.when(l == 0)
    def _():
        acc = jnp.dot(a_tile(), xw1_ref[...], preferred_element_type=jnp.float32)
        h_tile = jnp.maximum(acc + b1_ref[...], 0.0).astype(jnp.bfloat16)
        # dropout(p=0.5, training=False) -> identity
        hw2_s[pl.ds(row0, tm), :] = jnp.dot(
            h_tile, w2_ref[...], preferred_element_type=jnp.float32).astype(jnp.bfloat16)

    @pl.when(jnp.logical_and(l == 1, i == 0))
    def _():
        pooled_s[...] = jnp.zeros_like(pooled_s)

    # ---- phase 1: conv2 + mean pool: pooled += P[:, rows] @ relu(A_tile @ hW2 + b2)
    @pl.when(l == 1)
    def _():
        acc = jnp.dot(a_tile(), hw2_s[...], preferred_element_type=jnp.float32)
        h2 = jnp.maximum(acc + b2_ref[...], 0.0)
        # dropout(p=0.5, training=False) -> identity
        pooled_s[...] += jnp.dot(p_ref[...], h2.astype(jnp.bfloat16),
                                 preferred_element_type=jnp.float32)

    # ---- final grid step: fc + masked log_softmax (classes padded to 128 lanes)
    @pl.when(jnp.logical_and(l == 1, i == last))
    def _():
        logits = jnp.dot(pooled_s[...].astype(jnp.bfloat16), wfc_ref[...],
                         preferred_element_type=jnp.float32) + bfc_ref[...]
        cls = jax.lax.broadcasted_iota(jnp.int32, logits.shape, 1)
        logits = jnp.where(cls < num_classes, logits, -1e30)
        m = jnp.max(logits, axis=-1, keepdims=True)
        z = logits - m
        lse = jnp.log(jnp.sum(jnp.exp(z), axis=-1, keepdims=True))
        o_ref[...] = z - lse


def fused_gcn_pallas(a_hat, xw1, b1, w2, b2, pool_mat, w_fc, b_fc,
                     num_classes, tm, a_resident, vmem_limit):
    n_pad = a_hat.shape[0]
    h_p = xw1.shape[1]
    co_p = w2.shape[1]
    k_p = w_fc.shape[1]
    g_p = pool_mat.shape[0]
    n_tiles = n_pad // tm

    kernel = functools.partial(_fused_gcn_kernel, num_classes, tm, a_resident)

    def nbytes(a):
        return a.size * a.dtype.itemsize

    flops = (2 * n_pad * n_pad * h_p          # A_hat @ XW1
             + 2 * n_pad * h_p * co_p         # h @ W2 (per-tile, phase 0)
             + 2 * n_pad * n_pad * co_p       # A_hat @ hW2
             + 2 * g_p * n_pad * co_p         # pooling matmul
             + 2 * g_p * co_p * k_p)          # fc
    a_passes = 1 if a_resident else 2
    bytes_accessed = (a_passes * nbytes(a_hat)
                      + nbytes(xw1) + nbytes(b1) + nbytes(w2) + nbytes(b2)
                      + nbytes(pool_mat) + nbytes(w_fc) + nbytes(b_fc)
                      + g_p * k_p * 4)

    if a_resident:
        a_spec = pl.BlockSpec((n_pad, n_pad), lambda l, i: (0, 0))
    else:
        a_spec = pl.BlockSpec((tm, n_pad), lambda l, i: (i, 0))

    return pl.pallas_call(
        kernel,
        out_shape=jax.ShapeDtypeStruct((g_p, k_p), jnp.float32),
        grid_spec=pltpu.PrefetchScalarGridSpec(
            num_scalar_prefetch=0,
            grid=(2, n_tiles),
            in_specs=[
                a_spec,                                                 # A_hat
                pl.BlockSpec((n_pad, h_p), lambda l, i: (0, 0)),        # XW1 (precomputed)
                pl.BlockSpec((1, h_p), lambda l, i: (0, 0)),            # b1
                pl.BlockSpec((h_p, co_p), lambda l, i: (0, 0)),         # W2
                pl.BlockSpec((1, co_p), lambda l, i: (0, 0)),           # b2
                pl.BlockSpec((g_p, tm), lambda l, i: (0, l * i)),       # P cols (phase 1 only)
                pl.BlockSpec((co_p, k_p), lambda l, i: (0, 0)),         # W_fc
                pl.BlockSpec((1, k_p), lambda l, i: (0, 0)),            # b_fc
            ],
            out_specs=pl.BlockSpec((g_p, k_p), lambda l, i: (0, 0)),
            scratch_shapes=[
                pltpu.VMEM((n_pad, co_p), jnp.bfloat16),  # hW2 = relu(conv1) @ W2
                pltpu.VMEM((g_p, co_p), jnp.float32),     # pooled accumulator
            ],
        ),
        compiler_params=pltpu.CompilerParams(
            # scratch carries state across both grid axes -> must stay sequential
            dimension_semantics=("arbitrary", "arbitrary"),
            vmem_limit_bytes=vmem_limit,
        ),
        cost_estimate=pl.CostEstimate(flops=flops,
                                      transcendentals=2 * g_p * k_p,
                                      bytes_accessed=bytes_accessed),
    )(a_hat, xw1, b1, w2, b2, pool_mat, w_fc, b_fc)


# ------------------------------- glue (JAX) --------------------------------

def build_norm_adj(edge_index, num_nodes):
    """Dense GCN-normalized adjacency: A_hat = D^{-1/2} (A + I) D^{-1/2} (PyG semantics)."""
    src = edge_index[0]
    dst = edge_index[1]
    loop = jnp.arange(num_nodes, dtype=src.dtype)
    src = jnp.concatenate([src, loop])
    dst = jnp.concatenate([dst, loop])
    deg = jnp.zeros((num_nodes,), jnp.float32).at[dst].add(1.0)
    dinv = jax.lax.rsqrt(jnp.maximum(deg, 1.0))
    norm = dinv[src] * dinv[dst]
    a_hat = jnp.zeros((num_nodes, num_nodes), jnp.float32).at[dst, src].add(norm)
    return a_hat


def build_mean_pool_matrix(batch, num_graphs, num_nodes):
    """P[g, n] = 1/count_g if batch[n] == g else 0, so P @ X is the per-graph mean."""
    onehot = (batch[None, :] == jnp.arange(num_graphs)[:, None]).astype(jnp.float32)
    counts = jnp.maximum(onehot.sum(axis=1, keepdims=True), 1.0)
    return onehot / counts


def init_params(key, in_channels, hidden_channels, out_channels, num_classes):
    k1, k2, k3 = jax.random.split(key, 3)
    s1 = 1.0 / jnp.sqrt(in_channels)
    s2 = 1.0 / jnp.sqrt(hidden_channels)
    s3 = 1.0 / jnp.sqrt(out_channels)
    return {
        "w1": jax.random.uniform(k1, (in_channels, hidden_channels), jnp.float32, -s1, s1),
        "b1": jnp.zeros((hidden_channels,), jnp.float32),
        "w2": jax.random.uniform(k2, (hidden_channels, out_channels), jnp.float32, -s2, s2),
        "b2": jnp.zeros((out_channels,), jnp.float32),
        "w_fc": jax.random.uniform(k3, (out_channels, num_classes), jnp.float32, -s3, s3),
        "b_fc": jnp.zeros((num_classes,), jnp.float32),
    }


@functools.partial(jax.jit, static_argnames=("num_graphs", "num_classes"))
def gcn_forward(params, x, edge_index, batch, num_graphs, num_classes):
    n, _ = x.shape
    hid = params["w1"].shape[1]
    cout = params["w2"].shape[1]

    a_hat = build_norm_adj(edge_index, n)
    pool_mat = build_mean_pool_matrix(batch, num_graphs, n)

    # --- TPU-friendly padded shapes.  Zero padding is semantics-preserving: padded nodes
    #     have zero adjacency rows/cols and zero pooling weight; padded channel columns of
    #     W2/W_fc are zero; padded classes are masked inside the kernel.
    h_p = _ceil_to(hid, 128)
    co_p = _ceil_to(cout, 128)
    k_p = _ceil_to(num_classes, 128)
    g_p = _ceil_to(num_graphs, 8)
    tm, n_pad, a_resident, vmem_limit = _choose_tiling(n, h_p, co_p, k_p, g_p)

    def pad2(a, r, c):
        return jnp.pad(a, ((0, r - a.shape[0]), (0, c - a.shape[1])))

    # XW1 computed once outside the kernel (tiny-K matmul; frees VMEM, removes the
    # one-shot serial matmul before the streaming pipeline warms up).
    xw1 = jnp.dot(x, params["w1"])                                   # (n, hid) f32
    xw1_p = pad2(xw1, n_pad, h_p).astype(jnp.bfloat16)

    a_p = pad2(a_hat, n_pad, n_pad).astype(jnp.bfloat16)
    w2_p = pad2(params["w2"], h_p, co_p).astype(jnp.bfloat16)
    wfc_p = pad2(params["w_fc"], co_p, k_p).astype(jnp.bfloat16)
    b1_p = jnp.pad(params["b1"], (0, h_p - hid)).reshape(1, h_p).astype(jnp.float32)
    b2_p = jnp.pad(params["b2"], (0, co_p - cout)).reshape(1, co_p).astype(jnp.float32)
    bfc_p = jnp.pad(params["b_fc"], (0, k_p - num_classes)).reshape(1, k_p).astype(jnp.float32)
    p_p = pad2(pool_mat, g_p, n_pad).astype(jnp.bfloat16)

    out_p = fused_gcn_pallas(a_p, xw1_p, b1_p, w2_p, b2_p, p_p, wfc_p, bfc_p,
                             num_classes, tm, a_resident, vmem_limit)
    return out_p[:num_graphs, :num_classes]


# --------------------------------- main ------------------------------------

if __name__ == "__main__":
    key = jax.random.PRNGKey(0)
    k_feat, k_edge, k_param = jax.random.split(key, 3)

    num_nodes = 16
    in_channels = 4
    hidden_channels = 32
    out_channels = 8
    num_classes = 3
    num_graphs = 2
    num_edges = 32

    x = jax.random.normal(k_feat, (num_nodes, in_channels), jnp.float32)
    edge_index = jax.random.randint(k_edge, (2, num_edges), 0, num_nodes, jnp.int32)
    # dict_node: graph assignment per node (first half -> graph 0, rest -> graph 1)
    batch = (jnp.arange(num_nodes) >= num_nodes // 2).astype(jnp.int32)

    params = init_params(k_param, in_channels, hidden_channels, out_channels,
                         num_classes)

    out = gcn_forward(params, x, edge_index, batch, num_graphs, num_classes)
    out = jax.block_until_ready(out)

    assert out.shape == (num_graphs, num_classes)
    assert bool(jnp.all(jnp.isfinite(out)))
    # rows of log_softmax must exp-sum to 1
    assert bool(jnp.allclose(jnp.exp(out).sum(axis=1), 1.0, atol=1e-5))
    print("KERNEL_OK")
</pallas_src>

<mosaic_0001>
module attributes {stable_mosaic.version = 11 : i64} {
  func.func private @main(%arg0: i32) attributes {dimension_semantics = [#tpu.dimension_semantics<core_parallel>], iteration_bounds = array<i64: 2>, tpu.core_type = #tpu.core_type<sc_scalar_subcore>, window_params = []} {
    return
  }
}

module attributes {stable_mosaic.version = 11 : i64} {
  func.func private @main(%arg0: i32) attributes {dimension_semantics = [#tpu.dimension_semantics<core_parallel>], iteration_bounds = array<i64: 2>, tpu.core_type = #tpu.core_type<sc_scalar_subcore>, window_params = []} {
    return
  }
}

module attributes {stable_mosaic.version = 11 : i64} {
  func.func @_fused_gcn_kernel(%arg0: i32, %arg1: i32, %arg2: memref<128x128xbf16, #tpu.memory_space<vmem>>, %arg3: memref<128x128xbf16, #tpu.memory_space<vmem>>, %arg4: memref<1x128xf32, #tpu.memory_space<vmem>>, %arg5: memref<128x128xbf16, #tpu.memory_space<vmem>>, %arg6: memref<1x128xf32, #tpu.memory_space<vmem>>, %arg7: memref<8x128xbf16, #tpu.memory_space<vmem>>, %arg8: memref<128x128xbf16, #tpu.memory_space<vmem>>, %arg9: memref<1x128xf32, #tpu.memory_space<vmem>>, %arg10: memref<8x128xf32, #tpu.memory_space<vmem>>, %arg11: memref<128x128xbf16, #tpu.memory_space<vmem>>, %arg12: memref<8x128xf32, #tpu.memory_space<vmem>>) attributes {dimension_semantics = [#tpu.dimension_semantics<arbitrary>, #tpu.dimension_semantics<arbitrary>], iteration_bounds = array<i64: 2, 1>, scalar_prefetch = 0 : i64, scratch_operands = 2 : i64, tpu.core_type = #tpu.core_type<tc>, window_params = [{pipeline_mode = #tpu.pipeline_mode<synchronous>, transform_indices = @transform_0, window_bounds = array<i64: 128, 128>}, {pipeline_mode = #tpu.pipeline_mode<synchronous>, transform_indices = @transform_1, window_bounds = array<i64: 128, 128>}, {pipeline_mode = #tpu.pipeline_mode<synchronous>, transform_indices = @transform_2, window_bounds = array<i64: 1, 128>}, {pipeline_mode = #tpu.pipeline_mode<synchronous>, transform_indices = @transform_3, window_bounds = array<i64: 128, 128>}, {pipeline_mode = #tpu.pipeline_mode<synchronous>, transform_indices = @transform_4, window_bounds = array<i64: 1, 128>}, {transform_indices = @transform_5, window_bounds = array<i64: 8, 128>}, {pipeline_mode = #tpu.pipeline_mode<synchronous>, transform_indices = @transform_6, window_bounds = array<i64: 128, 128>}, {pipeline_mode = #tpu.pipeline_mode<synchronous>, transform_indices = @transform_7, window_bounds = array<i64: 1, 128>}, {pipeline_mode = #tpu.pipeline_mode<synchronous>, transform_indices = @transform_8, window_bounds = array<i64: 8, 128>}]} {
    %c128_i32 = arith.constant 128 : i32
    %0 = arith.muli %arg1, %c128_i32 : i32
    %1 = tpu.assume_multiple %0, 128 : i32
    %c0_i32 = arith.constant 0 : i32
    %2 = arith.cmpi eq, %arg0, %c0_i32 : i32
    %3 = arith.extui %2 : i1 to i32
    %c0_i32_0 = arith.constant 0 : i32
    %4 = arith.cmpi ne, %3, %c0_i32_0 : i32
    scf.if %4 {
      %18 = arith.index_cast %1 : i32 to index
      %c0 = arith.constant 0 : index
      %19 = vector.load %arg2[%18, %c0] : memref<128x128xbf16, #tpu.memory_space<vmem>>, vector<128x128xbf16>
      %c0_8 = arith.constant 0 : index
      %c0_9 = arith.constant 0 : index
      %20 = vector.load %arg3[%c0_8, %c0_9] : memref<128x128xbf16, #tpu.memory_space<vmem>>, vector<128x128xbf16>
      %cst = arith.constant dense<0.000000e+00> : vector<128x128xf32>
      %21 = tpu.matmul %19, %20, %cst {dimension_numbers = #tpu.dot_dimension_numbers<[1], [0], [0], [1], [0, 0, 1, 1], [], []>} : vector<128x128xbf16>, vector<128x128xbf16>, vector<128x128xf32> -> vector<128x128xf32>
      %c0_10 = arith.constant 0 : index
      %c0_11 = arith.constant 0 : index
      %22 = vector.load %arg4[%c0_10, %c0_11] : memref<1x128xf32, #tpu.memory_space<vmem>>, vector<1x128xf32>
      %23 = vector.broadcast %22 : vector<1x128xf32> to vector<128x128xf32>
      %24 = arith.addf %21, %23 : vector<128x128xf32>
      %cst_12 = arith.constant 0.000000e+00 : f32
      %25 = vector.broadcast %cst_12 : f32 to vector<128x128xf32>
      %26 = arith.maximumf %24, %25 : vector<128x128xf32>
      %27 = arith.truncf %26 : vector<128x128xf32> to vector<128x128xbf16>
      %c0_13 = arith.constant 0 : index
      %c0_14 = arith.constant 0 : index
      %28 = vector.load %arg5[%c0_13, %c0_14] : memref<128x128xbf16, #tpu.memory_space<vmem>>, vector<128x128xbf16>
      %cst_15 = arith.constant dense<0.000000e+00> : vector<128x128xf32>
      %29 = tpu.matmul %27, %28, %cst_15 {dimension_numbers = #tpu.dot_dimension_numbers<[1], [0], [0], [1], [0, 0, 1, 1], [], []>} : vector<128x128xbf16>, vector<128x128xbf16>, vector<128x128xf32> -> vector<128x128xf32>
      %30 = arith.truncf %29 : vector<128x128xf32> to vector<128x128xbf16>
      %31 = arith.index_cast %1 : i32 to index
      %c0_16 = arith.constant 0 : index
      %32 = vector.load %arg11[%31, %c0_16] : memref<128x128xbf16, #tpu.memory_space<vmem>>, vector<128x128xbf16>
      tpu.vector_store %arg11[%31, %c0_16], %30 {strides = array<i32>} : memref<128x128xbf16, #tpu.memory_space<vmem>>, vector<128x128xbf16>,
    } else {
    }
    %c1_i32 = arith.constant 1 : i32
    %5 = arith.cmpi eq, %arg0, %c1_i32 : i32
    %c0_i32_1 = arith.constant 0 : i32
    %6 = arith.cmpi eq, %arg1, %c0_i32_1 : i32
    %7 = arith.andi %5, %6 : i1
    %8 = arith.extui %7 : i1 to i32
    %c0_i32_2 = arith.constant 0 : i32
    %9 = arith.cmpi ne, %8, %c0_i32_2 : i32
    scf.if %9 {
      %cst = arith.constant 0.000000e+00 : f32
      %18 = vector.broadcast %cst : f32 to vector<8x128xf32>
      %c0 = arith.constant 0 : index
      %c0_8 = arith.constant 0 : index
      %19 = vector.load %arg12[%c0, %c0_8] : memref<8x128xf32, #tpu.memory_space<vmem>>, vector<8x128xf32>
      tpu.vector_store %arg12[%c0, %c0_8], %18 {strides = array<i32>} : memref<8x128xf32, #tpu.memory_space<vmem>>, vector<8x128xf32>,
    } else {
    }
    %c1_i32_3 = arith.constant 1 : i32
    %10 = arith.cmpi eq, %arg0, %c1_i32_3 : i32
    %11 = arith.extui %10 : i1 to i32
    %c0_i32_4 = arith.constant 0 : i32
    %12 = arith.cmpi ne, %11, %c0_i32_4 : i32
    scf.if %12 {
      %18 = arith.index_cast %1 : i32 to index
      %c0 = arith.constant 0 : index
      %19 = vector.load %arg2[%18, %c0] : memref<128x128xbf16, #tpu.memory_space<vmem>>, vector<128x128xbf16>
      %c0_8 = arith.constant 0 : index
      %c0_9 = arith.constant 0 : index
      %20 = vector.load %arg11[%c0_8, %c0_9] : memref<128x128xbf16, #tpu.memory_space<vmem>>, vector<128x128xbf16>
      %cst = arith.constant dense<0.000000e+00> : vector<128x128xf32>
      %21 = tpu.matmul %19, %20, %cst {dimension_numbers = #tpu.dot_dimension_numbers<[1], [0], [0], [1], [0, 0, 1, 1], [], []>} : vector<128x128xbf16>, vector<128x128xbf16>, vector<128x128xf32> -> vector<128x128xf32>
      %c0_10 = arith.constant 0 : index
      %c0_11 = arith.constant 0 : index
      %22 = vector.load %arg6[%c0_10, %c0_11] : memref<1x128xf32, #tpu.memory_space<vmem>>, vector<1x128xf32>
      %23 = vector.broadcast %22 : vector<1x128xf32> to vector<128x128xf32>
      %24 = arith.addf %21, %23 : vector<128x128xf32>
      %cst_12 = arith.constant 0.000000e+00 : f32
      %25 = vector.broadcast %cst_12 : f32 to vector<128x128xf32>
      %26 = arith.maximumf %24, %25 : vector<128x128xf32>
      %c0_13 = arith.constant 0 : index
      %c0_14 = arith.constant 0 : index
      %27 = vector.load %arg12[%c0_13, %c0_14] : memref<8x128xf32, #tpu.memory_space<vmem>>, vector<8x128xf32>
      %c0_15 = arith.constant 0 : index
      %c0_16 = arith.constant 0 : index
      %28 = vector.load %arg7[%c0_15, %c0_16] : memref<8x128xbf16, #tpu.memory_space<vmem>>, vector<8x128xbf16>
      %29 = arith.truncf %26 : vector<128x128xf32> to vector<128x128xbf16>
      %cst_17 = arith.constant dense<0.000000e+00> : vector<8x128xf32>
      %30 = tpu.matmul %28, %29, %cst_17 {dimension_numbers = #tpu.dot_dimension_numbers<[1], [0], [0], [1], [0, 0, 1, 1], [], []>} : vector<8x128xbf16>, vector<128x128xbf16>, vector<8x128xf32> -> vector<8x128xf32>
      %31 = arith.addf %27, %30 : vector<8x128xf32>
      %c0_18 = arith.constant 0 : index
      %c0_19 = arith.constant 0 : index
      %32 = vector.load %arg12[%c0_18, %c0_19] : memref<8x128xf32, #tpu.memory_space<vmem>>, vector<8x128xf32>
      tpu.vector_store %arg12[%c0_18, %c0_19], %31 {strides = array<i32>} : memref<8x128xf32, #tpu.memory_space<vmem>>, vector<8x128xf32>,
    } else {
    }
    %c1_i32_5 = arith.constant 1 : i32
    %13 = arith.cmpi eq, %arg0, %c1_i32_5 : i32
    %c0_i32_6 = arith.constant 0 : i32
    %14 = arith.cmpi eq, %arg1, %c0_i32_6 : i32
    %15 = arith.andi %13, %14 : i1
    %16 = arith.extui %15 : i1 to i32
    %c0_i32_7 = arith.constant 0 : i32
    %17 = arith.cmpi ne, %16, %c0_i32_7 : i32
    scf.if %17 {
      %c0 = arith.constant 0 : index
      %c0_8 = arith.constant 0 : index
      %18 = vector.load %arg12[%c0, %c0_8] : memref<8x128xf32, #tpu.memory_space<vmem>>, vector<8x128xf32>
      %19 = arith.truncf %18 : vector<8x128xf32> to vector<8x128xbf16>
      %c0_9 = arith.constant 0 : index
      %c0_10 = arith.constant 0 : index
      %20 = vector.load %arg8[%c0_9, %c0_10] : memref<128x128xbf16, #tpu.memory_space<vmem>>, vector<128x128xbf16>
      %cst = arith.constant dense<0.000000e+00> : vector<8x128xf32>
      %21 = tpu.matmul %19, %20, %cst {dimension_numbers = #tpu.dot_dimension_numbers<[1], [0], [0], [1], [0, 0, 1, 1], [], []>} : vector<8x128xbf16>, vector<128x128xbf16>, vector<8x128xf32> -> vector<8x128xf32>
      %c0_11 = arith.constant 0 : index
      %c0_12 = arith.constant 0 : index
      %22 = vector.load %arg9[%c0_11, %c0_12] : memref<1x128xf32, #tpu.memory_space<vmem>>, vector<1x128xf32>
      %23 = vector.broadcast %22 : vector<1x128xf32> to vector<8x128xf32>
      %24 = arith.addf %21, %23 : vector<8x128xf32>
      %25 = tpu.iota {dimensions = array<i32: 1>} : vector<8x128xi32>
      %c3_i32 = arith.constant 3 : i32
      %26 = vector.broadcast %c3_i32 : i32 to vector<8x128xi32>
      %27 = arith.cmpi slt, %25, %26 : vector<8x128xi32>
      %cst_13 = arith.constant -1.000000e+30 : f32
      %28 = vector.broadcast %cst_13 : f32 to vector<8x128xf32>
      %29 = arith.select %27, %24, %28 : vector<8x128xi1>, vector<8x128xf32>
      %cst_14 = arith.constant dense<0xFF800000> : vector<8xf32>
      %30 = vector.multi_reduction <maximumf>, %29, %cst_14 [1] : vector<8x128xf32> to vector<8xf32>
      %31 = vector.shape_cast %30 : vector<8xf32> to vector<8x1xf32>
      %32 = vector.broadcast %31 : vector<8x1xf32> to vector<8x128xf32>
      %33 = arith.subf %29, %32 : vector<8x128xf32>
      %34 = math.exp %33 : vector<8x128xf32>
      %cst_15 = arith.constant dense<0.000000e+00> : vector<8xf32>
      %35 = vector.multi_reduction <add>, %34, %cst_15 [1] : vector<8x128xf32> to vector<8xf32>
      %36 = vector.shape_cast %35 : vector<8xf32> to vector<8x1xf32>
      %37 = math.log %36 : vector<8x1xf32>
      %38 = vector.broadcast %37 : vector<8x1xf32> to vector<8x128xf32>
      %39 = arith.subf %33, %38 : vector<8x128xf32>
      %c0_16 = arith.constant 0 : index
      %c0_17 = arith.constant 0 : index
      %40 = vector.load %arg10[%c0_16, %c0_17] : memref<8x128xf32, #tpu.memory_space<vmem>>, vector<8x128xf32>
      tpu.vector_store %arg10[%c0_16, %c0_17], %39 {strides = array<i32>} : memref<8x128xf32, #tpu.memory_space<vmem>>, vector<8x128xf32>,
    } else {
    }
    return
  }
  func.func @transform_0(%arg0: i32, %arg1: i32) -> (i32, i32) {
    %c0_i32 = arith.constant 0 : i32
    %c0_i32_0 = arith.constant 0 : i32
    %c0_i32_1 = arith.constant 0 : i32
    return %c0_i32, %c0_i32_0 : i32, i32
  }
  func.func @transform_1(%arg0: i32, %arg1: i32) -> (i32, i32) {
    %c0_i32 = arith.constant 0 : i32
    %c0_i32_0 = arith.constant 0 : i32
    %c0_i32_1 = arith.constant 0 : i32
    return %c0_i32, %c0_i32_0 : i32, i32
  }
  func.func @transform_2(%arg0: i32, %arg1: i32) -> (i32, i32) {
    %c0_i32 = arith.constant 0 : i32
    %c0_i32_0 = arith.constant 0 : i32
    %c0_i32_1 = arith.constant 0 : i32
    return %c0_i32, %c0_i32_0 : i32, i32
  }
  func.func @transform_3(%arg0: i32, %arg1: i32) -> (i32, i32) {
    %c0_i32 = arith.constant 0 : i32
    %c0_i32_0 = arith.constant 0 : i32
    %c0_i32_1 = arith.constant 0 : i32
    return %c0_i32, %c0_i32_0 : i32, i32
  }
  func.func @transform_4(%arg0: i32, %arg1: i32) -> (i32, i32) {
    %c0_i32 = arith.constant 0 : i32
    %c0_i32_0 = arith.constant 0 : i32
    %c0_i32_1 = arith.constant 0 : i32
    return %c0_i32, %c0_i32_0 : i32, i32
  }
  func.func @transform_5(%arg0: i32, %arg1: i32) -> (i32, i32) {
    %0 = arith.muli %arg0, %arg1 : i32
    %c0_i32 = arith.constant 0 : i32
    %c0_i32_0 = arith.constant 0 : i32
    return %c0_i32, %0 : i32, i32
  }
  func.func @transform_6(%arg0: i32, %arg1: i32) -> (i32, i32) {
    %c0_i32 = arith.constant 0 : i32
    %c0_i32_0 = arith.constant 0 : i32
    %c0_i32_1 = arith.constant 0 : i32
    return %c0_i32, %c0_i32_0 : i32, i32
  }
  func.func @transform_7(%arg0: i32, %arg1: i32) -> (i32, i32) {
    %c0_i32 = arith.constant 0 : i32
    %c0_i32_0 = arith.constant 0 : i32
    %c0_i32_1 = arith.constant 0 : i32
    return %c0_i32, %c0_i32_0 : i32, i32
  }
  func.func @transform_8(%arg0: i32, %arg1: i32) -> (i32, i32) {
    %c0_i32 = arith.constant 0 : i32
    %c0_i32_0 = arith.constant 0 : i32
    %c0_i32_1 = arith.constant 0 : i32
    return %c0_i32, %c0_i32_0 : i32, i32
  }
}

</mosaic_0001>

<bundles_post_ra>
// kernel: mul.1
= control target key start
LH: loop header
LB: loop body
LE: loop exit
PB: predicated region body
PF: predicated region fallthrough
CT: control target
= control target key end

     0   :  { %s34_s0 = inlined_call_operand.vmem [shape: f32[48], index: 0, kind: input, shape index: {}]   ;;  %s35_s1 = inlined_call_operand.vmem [shape: f32[48], index: 1, kind: input, shape index: {}]   ;;  %s36_s2 = inlined_call_operand.vmem [shape: f32[48], index: 2, kind: output, shape index: {}]  }
   0x1   :  { %v3_v0 = vld [vmem:[%s34_s0] sm:$0x1] }
   0x2   :  { %v4_v1 = vld [vmem:[%s35_s1] sm:$0x1] }
   0x3   :  { %v7_v2 = vmul.f32 %v4_v1, %v3_v0 }
   0x5   :  { %9 = vst [vmem:[%s36_s2] sm:$0x1] %v7_v2 }

// kernel: gcn_forward.1
= control target key start
LH: loop header
LB: loop body
LE: loop exit
PB: predicated region body
PF: predicated region fallthrough
CT: control target
= control target key end

     0   :  { %s1587_s27 = smov 0   ;;  %s1589_s28 = smov 0   ;;  %s1767_s0 = inlined_call_operand.vmem [shape: bf16[128,128], index: 0, kind: input, shape index: {}]   ;;  %s1768_s1 = inlined_call_operand.vmem [shape: bf16[128,128], index: 1, kind: input, shape index: {}]   ;;  %s1769_s2 = inlined_call_operand.vmem [shape: f32[1,128], index: 2, kind: input, shape index: {}]   ;;  %s1770_s3 = inlined_call_operand.vmem [shape: bf16[128,128], index: 3, kind: input, shape index: {}]   ;;  %s1771_s4 = inlined_call_operand.vmem [shape: f32[1,128], index: 4, kind: input, shape index: {}]   ;;  %s1772_s5 = inlined_call_operand.vmem [shape: bf16[8,128], index: 5, kind: input, shape index: {}]   ;;  %s1773_s6 = inlined_call_operand.vmem [shape: bf16[128,128], index: 6, kind: input, shape index: {}]   ;;  %s1774_s7 = inlined_call_operand.vmem [shape: f32[1,128], index: 7, kind: input, shape index: {}]   ;;  %s1775_s8 = inlined_call_operand.vmem [shape: f32[8,128], index: 8, kind: output, shape index: {}]  }
   0x1   :  { %s1591_s29 = smov 0  }
   0x2 LB: > { %s30_s30 = sadd.s32 1, %s1531_s28  ;;  %p1188_p0 = scmp.ge.s32.totalorder %s1535_s29, 1  ;;  %s1535_s29 = sphi %s1591_s29, %s18_s29   ;;  %s1531_s28 = sphi %s1589_s28, %s1777_s28   ;;  %s1527_s27 = sphi %s1587_s27, %s1776_s27  }
   0x3   : > { %p32_p1 = scmp.ge.s32.totalorder %s30_s30, 2  ;;  %p272_p2 = scmp.lt.s32.totalorder %s1535_s29, 3 }
   0x5   : > { %s1779_s30 = smov (%p32_p1, %s30_s30), 0  ;;  %p273_p3 = pnand %p1188_p0, %p272_p2 }
   0x6   : > { %p1189_p4 = scmp.ne.s32.totalorder (!%p273_p3), %s1527_s27, 0 }
   0x7   : > { %276 = sbr.rel (%p273_p3) target bundleno = 1584 (0x630), region = 52 }
   0xe   : > { %312 = sbr.rel (%p1189_p4) target bundleno = 511 (0x1ff), region = 56  ;;  %v1469_v0 = vld [vmem:[%s1768_s1] sm:$0xff] (!%p1189_p4)   ;;  %v1470_v1 = vld [vmem:[%s1768_s1 + $0x8] sm:$0xff] (!%p1189_p4)   ;;  %v1471_v2 = vld [vmem:[%s1768_s1 + $0x10] sm:$0xff] (!%p1189_p4)  }
   0xf   : > { %1304 = vmatprep.subr.bf16.mxu0 (!%p1189_p4), %v1469_v0  ;;  %v1472_v3 = vld [vmem:[%s1768_s1 + $0x18] sm:$0xff] (!%p1189_p4)   ;;  %v1477_v4 = vld [vmem:[%s1767_s0] sm:$0xff] (!%p1189_p4)   ;;  %v1474_v6 = vld [vmem:[%s1768_s1 + $0x28] sm:$0xff] (!%p1189_p4)  }
  0x10   : > { %1305 = vmatpush3.bf16.msra.mxu0 (!%p1189_p4), %v1469_v0  ;;  %1320 = vmatprep.mubr.bf16.mxu0 (!%p1189_p4), %v1477_v4  ;;  %v1473_v5 = vld [vmem:[%s1768_s1 + $0x20] sm:$0xff] (!%p1189_p4)   ;;  %v1486_v8 = vld [vmem:[%s1770_s3 + $0x8] sm:$0xff] (!%p1189_p4)   ;;  %v1475_v9 = vld [vmem:[%s1768_s1 + $0x30] sm:$0xff] (!%p1189_p4)  }
  0x11   : > { %1306 = vmatprep.subr.bf16.mxu0 (!%p1189_p4), %v1470_v1  ;;  %v1485_v7 = vld [vmem:[%s1770_s3] sm:$0xff] (!%p1189_p4)   ;;  %v1487_v10 = vld [vmem:[%s1770_s3 + $0x10] sm:$0xff] (!%p1189_p4)   ;;  %v1476_v11 = vld [vmem:[%s1768_s1 + $0x38] sm:$0xff] (!%p1189_p4)  }
  0x12   : > { %1336 = vmatprep.subr.bf16.mxu1 (!%p1189_p4), %v1485_v7  ;;  %v1488_v12 = vld [vmem:[%s1770_s3 + $0x18] sm:$0xff] (!%p1189_p4)   ;;  %v1489_v13 = vld [vmem:[%s1770_s3 + $0x20] sm:$0xff] (!%p1189_p4)   ;;  %v1478_v14 = vld [vmem:[%s1767_s0 + $0x8] sm:$0xff] (!%p1189_p4)  }
  0x13   : > { %1337 = vmatpush3.bf16.msra.mxu1 (!%p1189_p4), %v1485_v7  ;;  %v1479_v15 = vld [vmem:[%s1767_s0 + $0x10] sm:$0xff] (!%p1189_p4)   ;;  %v1490_v16 = vld [vmem:[%s1770_s3 + $0x28] sm:$0xff] (!%p1189_p4)   ;;  %v1480_v17 = vld [vmem:[%s1767_s0 + $0x18] sm:$0xff] (!%p1189_p4)  }
  0x14   : > { %1307 = vmatpush3.bf16.msra.mxu0 (!%p1189_p4), %v1470_v1  ;;  %1338 = vmatprep.subr.bf16.mxu1 (!%p1189_p4), %v1486_v8  ;;  %v1481_v18 = vld [vmem:[%s1767_s0 + $0x20] sm:$0xff] (!%p1189_p4)   ;;  %v1482_v19 = vld [vmem:[%s1767_s0 + $0x28] sm:$0xff] (!%p1189_p4)   ;;  %v1483_v20 = vld [vmem:[%s1767_s0 + $0x30] sm:$0xff] (!%p1189_p4)  }
  0x15   : > { %1308 = vmatprep.subr.bf16.mxu0 %v1471_v2  ;;  %v1484_v21 = vld [vmem:[%s1767_s0 + $0x38] sm:$0xff]   ;;  %v1491_v22 = vld [vmem:[%s1770_s3 + $0x30] sm:$0xff]   ;;  %v1190_v24 = vld [vmem:[%s1769_s2] ss:$0 sm:$0xff] }
  0x16   : > { %v1492_v23 = vld [vmem:[%s1770_s3 + $0x38] sm:$0xff]  }
  0x17   : > { %1339 = vmatpush3.bf16.msra.mxu1 %v1486_v8 }
  0x18   : > { %1309 = vmatpush3.bf16.msra.mxu0 %v1471_v2  ;;  %1340 = vmatprep.subr.bf16.mxu1 %v1487_v10 }
  0x19   : > { %1310 = vmatprep.subr.bf16.mxu0 %v1472_v3 }
  0x1b   : > { %1341 = vmatpush3.bf16.msra.mxu1 %v1487_v10 }
  0x1c   : > { %1311 = vmatpush3.bf16.msra.mxu0 %v1472_v3  ;;  %1342 = vmatprep.subr.bf16.mxu1 %v1488_v12 }
  0x1d   : > { %1312 = vmatprep.subr.bf16.mxu0 %v1473_v5 }
  0x1f   : > { %1343 = vmatpush3.bf16.msra.mxu1 %v1488_v12 }
  0x20   : > { %1313 = vmatpush3.bf16.msra.mxu0 %v1473_v5  ;;  %1344 = vmatprep.subr.bf16.mxu1 %v1489_v13 }
  0x21   : > { %1314 = vmatprep.subr.bf16.mxu0 %v1474_v6 }
  0x23   : > { %1345 = vmatpush3.bf16.msra.mxu1 %v1489_v13 }
  0x24   : > { %1315 = vmatpush3.bf16.msra.mxu0 %v1474_v6  ;;  %1346 = vmatprep.subr.bf16.mxu1 %v1490_v16 }
  0x25   : > { %1316 = vmatprep.subr.bf16.mxu0 %v1475_v9 }
  0x27   : > { %1347 = vmatpush3.bf16.msra.mxu1 %v1490_v16 }
  0x28   : > { %1317 = vmatpush3.bf16.msra.mxu0 %v1475_v9  ;;  %1348 = vmatprep.subr.bf16.mxu1 %v1491_v22 }
  0x29   : > { %1318 = vmatprep.subr.bf16.mxu0 %v1476_v11 }
  0x2b   : > { %1349 = vmatpush3.bf16.msra.mxu1 %v1491_v22 }
  0x2c   : > { %1319 = vmatpush3.bf16.msra.mxu0 %v1476_v11  ;;  %1350 = vmatprep.subr.bf16.mxu1 %v1492_v23 }
  0x2f   : > { %1321 = vmatmul.mubr.bf16.vlgmr.msra.gmra.mrb[0].mxu0 %v1478_v14  ;;  %1351 = vmatpush3.bf16.msra.mxu1 %v1492_v23 }
  0x30   : > { %1324 = vmatprep.mubr.bf16.mxu0 %v1479_v15 }
  0x37   : > { %1325 = vmatmul.mubr.bf16.gmra.mrb[4].mxu0 %v1480_v17 }
  0x38   : > { %1328 = vmatprep.mubr.bf16.mxu0 %v1481_v18 }
  0x3f   : > { %1329 = vmatmul.mubr.bf16.gmra.mrb[8].mxu0 %v1482_v19 }
  0x40   : > { %1332 = vmatprep.mubr.bf16.mxu0 %v1483_v20 }
  0x47   : > { %1333 = vmatmul.mubr.bf16.gmra.mrb[12].mxu0 %v1484_v21 }
 0x102   : > { %v1322_v25 = vpop.f32.mrb[0].mxu0 }
 0x103   : > { %v495_v26 = vadd.f32 %v1322_v25, %v1190_v24  ;;  %v486_v27 = vpop.f32.mrb[1].mxu0 }
 0x104   : > { %v487_v28 = vadd.f32 %v1190_v24, %v486_v27  ;;  %v1323_v29 = vpop.f32.mrb[2].mxu0 }
 0x105   : > { %v498_v30 = vadd.f32 %v1323_v29, %v1190_v24  ;;  %v489_v31 = vpop.f32.mrb[3].mxu0  ;;  %v551_v33 = vmax.f32 %v495_v26, 0.0 }
 0x106   : > { %v490_v32 = vadd.f32 %v1190_v24, %v489_v31  ;;  %v549_v35 = vmax.f32 %v487_v28, 0.0 }
 0x107   : > { %v552_v34 = vmax.f32 %v498_v30, 0.0 }
 0x108   : > { %v550_v36 = vmax.f32 %v490_v32, 0.0 }
 0x109   : > { %v566_v37 = vpack.c.bf16 %v552_v34, %v551_v33 }
 0x10a   : > { %v1326_v38 = vpop.f32.mrb[4].mxu0  ;;  %v565_v39 = vpack.c.bf16 %v550_v36, %v549_v35 }
 0x10b   : > { %v511_v40 = vadd.f32 %v1326_v38, %v1190_v24  ;;  %v502_v41 = vpop.f32.mrb[5].mxu0 }
 0x10c   : > { %v503_v42 = vadd.f32 %v1190_v24, %v502_v41  ;;  %v1327_v43 = vpop.f32.mrb[6].mxu0  ;;  %1352 = vmatprep.mubr.bf16.mxu1 %v565_v39 }
 0x10d   : > { %v514_v44 = vadd.f32 %v1327_v43, %v1190_v24  ;;  %v505_v45 = vpop.f32.mrb[7].mxu0  ;;  %1353 = vmatmul.mubr.bf16.vlgmr.msra.gmra.mrb[0].mxu1 %v566_v37  ;;  %v555_v47 = vmax.f32 %v511_v40, 0.0 }
 0x10e   : > { %v506_v46 = vadd.f32 %v1190_v24, %v505_v45  ;;  %v553_v49 = vmax.f32 %v503_v42, 0.0 }
 0x10f   : > { %v556_v48 = vmax.f32 %v514_v44, 0.0 }
 0x110   : > { %v554_v50 = vmax.f32 %v506_v46, 0.0 }
 0x111   : > { %v568_v51 = vpack.c.bf16 %v556_v48, %v555_v47 }
 0x112   : > { %v567_v52 = vpack.c.bf16 %v554_v50, %v553_v49  ;;  %v1330_v53 = vpop.f32.mrb[8].mxu0 }
 0x113   : > { %v527_v54 = vadd.f32 %v1330_v53, %v1190_v24  ;;  %v518_v55 = vpop.f32.mrb[9].mxu0 }
 0x114   : > { %v519_v56 = vadd.f32 %v1190_v24, %v518_v55  ;;  %v1331_v57 = vpop.f32.mrb[10].mxu0  ;;  %1356 = vmatprep.mubr.bf16.mxu1 %v567_v52 }
 0x115   : > { %v530_v58 = vadd.f32 %v1331_v57, %v1190_v24  ;;  %v521_v59 = vpop.f32.mrb[11].mxu0  ;;  %1357 = vmatmul.mubr.bf16.gmra.mrb[4].mxu1 %v568_v51  ;;  %v559_v61 = vmax.f32 %v527_v54, 0.0 }
 0x116   : > { %v522_v60 = vadd.f32 %v1190_v24, %v521_v59  ;;  %v557_v63 = vmax.f32 %v519_v56, 0.0 }
 0x117   : > { %v560_v62 = vmax.f32 %v530_v58, 0.0 }
 0x118   : > { %v558_v0 = vmax.f32 %v522_v60, 0.0 }
 0x119   : > { %v570_v1 = vpack.c.bf16 %v560_v62, %v559_v61 }
 0x11a   : > { %v569_v2 = vpack.c.bf16 %v558_v0, %v557_v63  ;;  %v1334_v3 = vpop.f32.mrb[12].mxu0 }
 0x11b   : > { %v543_v4 = vadd.f32 %v1334_v3, %v1190_v24  ;;  %v534_v5 = vpop.f32.mrb[13].mxu0 }
 0x11c   : > { %v535_v6 = vadd.f32 %v1190_v24, %v534_v5  ;;  %v1335_v7 = vpop.f32.mrb[14].mxu0  ;;  %1360 = vmatprep.mubr.bf16.mxu1 %v569_v2 }
 0x11d   : > { %v546_v8 = vadd.f32 %v1335_v7, %v1190_v24  ;;  %v537_v9 = vpop.f32.mrb[15].mxu0  ;;  %1361 = vmatmul.mubr.bf16.gmra.mrb[8].mxu1 %v570_v1  ;;  %v563_v11 = vmax.f32 %v543_v4, 0.0 }
 0x11e   : > { %v538_v10 = vadd.f32 %v1190_v24, %v537_v9  ;;  %v561_v13 = vmax.f32 %v535_v6, 0.0 }
 0x11f   : > { %v564_v12 = vmax.f32 %v546_v8, 0.0 }
 0x120   : > { %v562_v14 = vmax.f32 %v538_v10, 0.0 }
 0x121   : > { %v572_v15 = vpack.c.bf16 %v564_v12, %v563_v11 }
 0x122   : > { %v571_v16 = vpack.c.bf16 %v562_v14, %v561_v13 }
 0x124   : > { %1364 = vmatprep.mubr.bf16.mxu1 %v571_v16 }
 0x125   : > { %1365 = vmatmul.mubr.bf16.gmra.mrb[12].mxu1 %v572_v15 }
 0x1e0   : > { %v1354_v17 = vpop.f32.mrb[0].mxu1 }
 0x1e1   : > { %v671_v18 = vpop.f32.mrb[1].mxu1 }
 0x1e2   : > { %v1355_v19 = vpop.f32.mrb[2].mxu1 }
 0x1e3   : > { %v735_v20 = vpack.c.bf16 %v1355_v19, %v1354_v17  ;;  %v674_v21 = vpop.f32.mrb[3].mxu1 }
 0x1e4   : > { %v734_v22 = vpack.c.bf16 %v674_v21, %v671_v18 }
 0x1e5   : > { %747 = vst [vmem:[#allocation2 + $0x8] sm:$0xff] %v735_v20 }
 0x1e6   : > { %746 = vst [vmem:[#allocation2] sm:$0xff] %v734_v22 }
 0x1e8   : > { %v1358_v23 = vpop.f32.mrb[4].mxu1 }
 0x1e9   : > { %v687_v25 = vpop.f32.mrb[5].mxu1 }
 0x1ea   : > { %v1359_v26 = vpop.f32.mrb[6].mxu1 }
 0x1eb   : > { %v737_v24 = vpack.c.bf16 %v1359_v26, %v1358_v23  ;;  %v690_v27 = vpop.f32.mrb[7].mxu1 }
 0x1ec   : > { %v736_v28 = vpack.c.bf16 %v690_v27, %v687_v25 }
 0x1ed   : > { %749 = vst [vmem:[#allocation2 + $0x18] sm:$0xff] %v737_v24 }
 0x1ee   : > { %748 = vst [vmem:[#allocation2 + $0x10] sm:$0xff] %v736_v28 }
 0x1f0   : > { %v1362_v29 = vpop.f32.mrb[8].mxu1 }
 0x1f1   : > { %v703_v30 = vpop.f32.mrb[9].mxu1 }
 0x1f2   : > { %v1363_v31 = vpop.f32.mrb[10].mxu1 }
 0x1f3   : > { %v739_v32 = vpack.c.bf16 %v1363_v31, %v1362_v29  ;;  %v706_v33 = vpop.f32.mrb[11].mxu1 }
 0x1f4   : > { %v738_v34 = vpack.c.bf16 %v706_v33, %v703_v30 }
 0x1f5   : > { %751 = vst [vmem:[#allocation2 + $0x28] sm:$0xff] %v739_v32 }
 0x1f6   : > { %750 = vst [vmem:[#allocation2 + $0x20] sm:$0xff] %v738_v34 }
 0x1f8   : > { %v1366_v35 = vpop.f32.mrb[12].mxu1 }
 0x1f9   : > { %v719_v36 = vpop.f32.mrb[13].mxu1 }
 0x1fa   : > { %v1367_v37 = vpop.f32.mrb[14].mxu1 }
 0x1fb   : > { %v741_v38 = vpack.c.bf16 %v1367_v37, %v1366_v35  ;;  %v722_v39 = vpop.f32.mrb[15].mxu1 }
 0x1fc   : > { %v740_v40 = vpack.c.bf16 %v722_v39, %v719_v36 }
 0x1fd   : > { %753 = vst [vmem:[#allocation2 + $0x38] sm:$0xff] %v741_v38 }
 0x1fe   : > { %752 = vst [vmem:[#allocation2 + $0x30] sm:$0xff] %v740_v40 }
 0x1ff PF: > { %p754_p5 = scmp.eq.s32.totalorder %s1527_s27, 1 }
 0x200   : > { %v1537_v41 = vmov (%p754_p5), 0.0  }
 0x201   : > { %759 = sbr.rel (!%p754_p5) target bundleno = 520 (0x208), region = 60  ;;  %760 = vst [vmem:[#allocation3] sm:$0xff] (%p754_p5), %v1537_v41 }
 0x208 PF: > { %p1216_p6 = scmp.ne.s32.totalorder %s1527_s27, 1 }
 0x209   : > { %v784_v42 = vld [vmem:[#allocation2] sm:$0xff] (!%p1216_p6)  ;;  %v785_v43 = vld [vmem:[#allocation2 + $0x8] sm:$0xff] (!%p1216_p6)  ;;  %v1493_v44 = vld [vmem:[%s1767_s0] sm:$0xff] (!%p1216_p6)   ;;  %v1538_v58 = vmov (!%p1216_p6), 0.0   ;;  %vm1539_vm0 = vmmov (!%p1216_p6), 0  }
 0x20a   : > { %763 = sbr.rel (%p1216_p6) target bundleno = 1021 (0x3fd), region = 64  ;;  %1368 = vmatprep.subr.bf16.mxu0 (!%p1216_p6), %v784_v42  ;;  %v786_v45 = vld [vmem:[#allocation2 + $0x10] sm:$0xff] (!%p1216_p6)  ;;  %1384 = vmatprep.mubr.bf16.mxu0 (!%p1216_p6), %v1493_v44  ;;  %v787_v46 = vld [vmem:[#allocation2 + $0x18] sm:$0xff] (!%p1216_p6)  ;;  %v788_v47 = vld [vmem:[#allocation2 + $0x20] sm:$0xff] (!%p1216_p6) }
 0x20b   : > { %1369 = vmatpush3.bf16.msra.mxu0 (!%p1216_p6), %v784_v42  ;;  %v789_v48 = vld [vmem:[#allocation2 + $0x28] sm:$0xff] (!%p1216_p6)  ;;  %v790_v49 = vld [vmem:[#allocation2 + $0x30] sm:$0xff] (!%p1216_p6)  ;;  %v791_v50 = vld [vmem:[#allocation2 + $0x38] sm:$0xff] (!%p1216_p6)  ;;  %1400 = vmatprep.subr.bf16.mxu1 (!%p1216_p6), %v1538_v58 }
 0x20c   : > { %1370 = vmatprep.subr.bf16.mxu0 (!%p1216_p6), %v785_v43  ;;  %v1494_v51 = vld [vmem:[%s1767_s0 + $0x8] sm:$0xff] (!%p1216_p6)   ;;  %v1495_v52 = vld [vmem:[%s1767_s0 + $0x10] sm:$0xff] (!%p1216_p6)   ;;  %v1496_v53 = vld [vmem:[%s1767_s0 + $0x18] sm:$0xff] (!%p1216_p6)   ;;  %1416 = vmatprep.mubr.msk.bf16.mxu1 (!%p1216_p6), %vm1539_vm0, %v1538_v58 }
 0x20d   : > { %v1497_v54 = vld [vmem:[%s1767_s0 + $0x20] sm:$0xff] (!%p1216_p6)   ;;  %v1498_v55 = vld [vmem:[%s1767_s0 + $0x28] sm:$0xff] (!%p1216_p6)   ;;  %v1499_v56 = vld [vmem:[%s1767_s0 + $0x30] sm:$0xff] (!%p1216_p6)  }
 0x20e   : > { %v1500_v57 = vld [vmem:[%s1767_s0 + $0x38] sm:$0xff] (!%p1216_p6)   ;;  %v1217_v59 = vld [vmem:[%s1771_s4] ss:$0 sm:$0xff] (!%p1216_p6) }
 0x20f   : > { %1371 = vmatpush3.bf16.msra.mxu0 (!%p1216_p6), %v785_v43 }
 0x210   : > { %1372 = vmatprep.subr.bf16.mxu0 (!%p1216_p6), %v786_v45 }
 0x213   : > { %1373 = vmatpush3.bf16.msra.mxu0 %v786_v45 }
 0x214   : > { %1374 = vmatprep.subr.bf16.mxu0 %v787_v46 }
 0x217   : > { %1375 = vmatpush3.bf16.msra.mxu0 %v787_v46 }
 0x218   : > { %1376 = vmatprep.subr.bf16.mxu0 %v788_v47 }
 0x21b   : > { %1377 = vmatpush3.bf16.msra.mxu0 %v788_v47 }
 0x21c   : > { %1378 = vmatprep.subr.bf16.mxu0 %v789_v48 }
 0x21f   : > { %1379 = vmatpush3.bf16.msra.mxu0 %v789_v48 }
 0x220   : > { %1380 = vmatprep.subr.bf16.mxu0 %v790_v49 }
 0x223   : > { %1381 = vmatpush3.bf16.msra.mxu0 %v790_v49 }
 0x224   : > { %1382 = vmatprep.subr.bf16.mxu0 %v791_v50 }
 0x227   : > { %1383 = vmatpush3.bf16.msra.mxu0 %v791_v50 }
 0x22a   : > { %1385 = vmatmul.mubr.bf16.vlgmr.msra.gmra.mrb[0].mxu0 %v1494_v51 }
 0x22b   : > { %1388 = vmatprep.mubr.bf16.mxu0 %v1495_v52  ;;  %v961_v52 = vld [vmem:[%s1772_s5] sm:$0xf] }
 0x232   : > { %1389 = vmatmul.mubr.bf16.gmra.mrb[4].mxu0 %v1496_v53  ;;  %v960_v53 = vld [vmem:[#allocation3] sm:$0xff] }
 0x233   : > { %1392 = vmatprep.mubr.bf16.mxu0 %v1497_v54 }
 0x23a   : > { %1393 = vmatmul.mubr.bf16.gmra.mrb[8].mxu0 %v1498_v55 }
 0x23b   : > { %1396 = vmatprep.mubr.bf16.mxu0 %v1499_v56 }
 0x242   : > { %1397 = vmatmul.mubr.bf16.gmra.mrb[12].mxu0 %v1500_v57 }
 0x2fd   : > { %v1386_v60 = vpop.f32.mrb[0].mxu0 }
 0x2fe   : > { %v890_v61 = vadd.f32 %v1386_v60, %v1217_v59  ;;  %v881_v62 = vpop.f32.mrb[1].mxu0 }
 0x2ff   : > { %v882_v63 = vadd.f32 %v1217_v59, %v881_v62  ;;  %v1387_v0 = vpop.f32.mrb[2].mxu0 }
 0x300   : > { %v893_v1 = vadd.f32 %v1387_v0, %v1217_v59  ;;  %v884_v2 = vpop.f32.mrb[3].mxu0  ;;  %v946_v4 = vmax.f32 %v890_v61, 0.0 }
 0x301   : > { %v885_v3 = vadd.f32 %v1217_v59, %v884_v2  ;;  %v944_v6 = vmax.f32 %v882_v63, 0.0 }
 0x302   : > { %v947_v5 = vmax.f32 %v893_v1, 0.0 }
 0x303   : > { %v945_v7 = vmax.f32 %v885_v3, 0.0 }
 0x304   : > { %v963_v8 = vpack.c.bf16 %v947_v5, %v946_v4 }
 0x305   : > { %v1390_v9 = vpop.f32.mrb[4].mxu0  ;;  %v962_v10 = vpack.c.bf16 %v945_v7, %v944_v6 }
 0x306   : > { %v906_v11 = vadd.f32 %v1390_v9, %v1217_v59  ;;  %v897_v12 = vpop.f32.mrb[5].mxu0 }
 0x307   : > { %v898_v13 = vadd.f32 %v1217_v59, %v897_v12  ;;  %v1391_v14 = vpop.f32.mrb[6].mxu0  ;;  %1401 = vmatpush3.bf16.msra.mxu1 %v962_v10 }
 0x308   : > { %v909_v15 = vadd.f32 %v1391_v14, %v1217_v59  ;;  %v900_v16 = vpop.f32.mrb[7].mxu0  ;;  %1402 = vmatprep.subr.bf16.mxu1 %v1538_v58  ;;  %v950_v18 = vmax.f32 %v906_v11, 0.0 }
 0x309   : > { %v901_v17 = vadd.f32 %v1217_v59, %v900_v16  ;;  %v948_v20 = vmax.f32 %v898_v13, 0.0 }
 0x30a   : > { %v951_v19 = vmax.f32 %v909_v15, 0.0 }
 0x30b   : > { %v949_v21 = vmax.f32 %v901_v17, 0.0  ;;  %1403 = vmatpush3.bf16.msra.mxu1 %v963_v8 }
 0x30c   : > { %v965_v22 = vpack.c.bf16 %v951_v19, %v950_v18  ;;  %1404 = vmatprep.subr.bf16.mxu1 %v1538_v58 }
 0x30d   : > { %v964_v23 = vpack.c.bf16 %v949_v21, %v948_v20  ;;  %v1394_v25 = vpop.f32.mrb[8].mxu0 }
 0x30e   : > { %v922_v26 = vadd.f32 %v1394_v25, %v1217_v59  ;;  %v913_v24 = vpop.f32.mrb[9].mxu0 }
 0x30f   : > { %v914_v27 = vadd.f32 %v1217_v59, %v913_v24  ;;  %v1395_v28 = vpop.f32.mrb[10].mxu0  ;;  %1405 = vmatpush3.bf16.msra.mxu1 %v964_v23 }
 0x310   : > { %v925_v29 = vadd.f32 %v1395_v28, %v1217_v59  ;;  %v916_v30 = vpop.f32.mrb[11].mxu0  ;;  %1406 = vmatprep.subr.bf16.mxu1 %v1538_v58  ;;  %v954_v32 = vmax.f32 %v922_v26, 0.0 }
 0x311   : > { %v917_v31 = vadd.f32 %v1217_v59, %v916_v30  ;;  %v952_v34 = vmax.f32 %v914_v27, 0.0 }
 0x312   : > { %v955_v33 = vmax.f32 %v925_v29, 0.0 }
 0x313   : > { %v953_v35 = vmax.f32 %v917_v31, 0.0  ;;  %1407 = vmatpush3.bf16.msra.mxu1 %v965_v22 }
 0x314   : > { %v967_v36 = vpack.c.bf16 %v955_v33, %v954_v32  ;;  %1408 = vmatprep.subr.bf16.mxu1 %v1538_v58 }
 0x315   : > { %v966_v37 = vpack.c.bf16 %v953_v35, %v952_v34  ;;  %v1398_v38 = vpop.f32.mrb[12].mxu0 }
 0x316   : > { %v938_v39 = vadd.f32 %v1398_v38, %v1217_v59  ;;  %v929_v40 = vpop.f32.mrb[13].mxu0 }
 0x317   : > { %v930_v41 = vadd.f32 %v1217_v59, %v929_v40  ;;  %v1399_v42 = vpop.f32.mrb[14].mxu0  ;;  %1409 = vmatpush3.bf16.msra.mxu1 %v966_v37 }
 0x318   : > { %v941_v43 = vadd.f32 %v1399_v42, %v1217_v59  ;;  %v932_v44 = vpop.f32.mrb[15].mxu0  ;;  %1410 = vmatprep.subr.bf16.mxu1 %v1538_v58  ;;  %v958_v46 = vmax.f32 %v938_v39, 0.0 }
 0x319   : > { %v933_v45 = vadd.f32 %v1217_v59, %v932_v44  ;;  %v956_v48 = vmax.f32 %v930_v41, 0.0 }
 0x31a   : > { %v959_v47 = vmax.f32 %v941_v43, 0.0 }
 0x31b   : > { %v957_v49 = vmax.f32 %v933_v45, 0.0  ;;  %1411 = vmatpush3.bf16.msra.mxu1 %v967_v36 }
 0x31c   : > { %v969_v50 = vpack.c.bf16 %v959_v47, %v958_v46  ;;  %1412 = vmatprep.subr.bf16.mxu1 %v1538_v58 }
 0x31d   : > { %v968_v51 = vpack.c.bf16 %v957_v49, %v956_v48 }
 0x31f   : > { %1413 = vmatpush3.bf16.msra.mxu1 %v968_v51 }
 0x320   : > { %1414 = vmatprep.subr.bf16.mxu1 %v1538_v58 }
 0x323   : > { %1415 = vmatpush3.bf16.msra.mxu1 %v969_v50 }
 0x326   : > { %1417 = vmatmul.mubr.bf16.vlgmr.msra.gmra.mrb[0].mxu1 %v961_v52 }
 0x3f9   : > { %v1004_v54 = vpop.f32.mrb[0].mxu1 }
 0x3fa   : > { %v1010_v55 = vadd.f32 %v1004_v54, %v960_v53  ;;  %v1418_v56 = vpop.f32.mrb[1].mxu1 }
 0x3fb   : > { %v1007_v57 = vpop.f32.mrb[2].mxu1 }
 0x3fc   : > { %1011 = vst [vmem:[#allocation3] sm:$0xff] %v1010_v55  ;;  %v1419_v59 = vpop.f32.mrb[3].mxu1 }
 0x3fd PF: > { %1013 = sbr.rel (!%p754_p5) target bundleno = 1584 (0x630), region = 68  ;;  %v1501_v58 = vld [vmem:[%s1773_s6] sm:$0xff] (%p754_p5)   ;;  %v1540_v60 = vmov (%p754_p5), 0.0   ;;  %v1502_v61 = vld [vmem:[%s1773_s6 + $0x8] sm:$0xff] (%p754_p5)   ;;  %vm1541_vm1 = vmmov (%p754_p5), 0   ;;  %v1503_v62 = vld [vmem:[%s1773_s6 + $0x10] sm:$0xff] (%p754_p5)   ;;  %v1127_v6 = vlaneseq (%p754_p5) }
 0x3fe   : > { %1420 = vmatprep.subr.bf16.mxu0 (%p754_p5), %v1540_v60  ;;  %1436 = vmatprep.mubr.msk.bf16.mxu0 (%p754_p5), %vm1541_vm1, %v1540_v60  ;;  %v1504_v63 = vld [vmem:[%s1773_s6 + $0x18] sm:$0xff] (%p754_p5)   ;;  %v1505_v0 = vld [vmem:[%s1773_s6 + $0x20] sm:$0xff] (%p754_p5)   ;;  %v1506_v1 = vld [vmem:[%s1773_s6 + $0x28] sm:$0xff] (%p754_p5)  }
 0x3ff   : > { %1421 = vmatpush3.bf16.msra.mxu0 (%p754_p5), %v1501_v58  ;;  %v1507_v2 = vld [vmem:[%s1773_s6 + $0x30] sm:$0xff] (%p754_p5)   ;;  %v1508_v3 = vld [vmem:[%s1773_s6 + $0x38] sm:$0xff] (%p754_p5)   ;;  %v1128_v7 = vand.u32 (%p754_p5), 127, %v1127_v6  ;;  %v1226_v8 = vld [vmem:[%s1774_s7] ss:$0 sm:$0xff] (%p754_p5) }
 0x400   : > { %1422 = vmatprep.subr.bf16.mxu0 (%p754_p5), %v1540_v60 }
 0x401   : > { %vm1129_vm2 = vcmp.lt.s32.totalorder (%p754_p5), %v1128_v7, 3 }
 0x403   : > { %1423 = vmatpush3.bf16.msra.mxu0 (%p754_p5), %v1502_v61  ;;  %v1014_v4 = vld [vmem:[#allocation3] sm:$0xff] (%p754_p5) }
 0x404   : > { %1424 = vmatprep.subr.bf16.mxu0 %v1540_v60  ;;  %v1015_v5 = vpack.c.bf16 %v1014_v4, %v1014_v4 }
 0x407   : > { %1425 = vmatpush3.bf16.msra.mxu0 %v1503_v62 }
 0x408   : > { %1426 = vmatprep.subr.bf16.mxu0 %v1540_v60 }
 0x40b   : > { %1427 = vmatpush3.bf16.msra.mxu0 %v1504_v63 }
 0x40c   : > { %1428 = vmatprep.subr.bf16.mxu0 %v1540_v60 }
 0x40f   : > { %1429 = vmatpush3.bf16.msra.mxu0 %v1505_v0 }
 0x410   : > { %1430 = vmatprep.subr.bf16.mxu0 %v1540_v60 }
 0x413   : > { %1431 = vmatpush3.bf16.msra.mxu0 %v1506_v1 }
 0x414   : > { %1432 = vmatprep.subr.bf16.mxu0 %v1540_v60 }
 0x417   : > { %1433 = vmatpush3.bf16.msra.mxu0 %v1507_v2 }
 0x418   : > { %1434 = vmatprep.subr.bf16.mxu0 %v1540_v60 }
 0x41b   : > { %1435 = vmatpush3.bf16.msra.mxu0 %v1508_v3 }
 0x41e   : > { %1437 = vmatmul.mubr.bf16.vlgmr.msra.gmra.mrb[0].mxu0 %v1015_v5 }
 0x4f1   : > { %v1121_v9 = vpop.f32.mrb[0].mxu0 }
 0x4f2   : > { %v1122_v10 = vadd.f32 %v1226_v8, %v1121_v9  ;;  %v1438_v11 = vpop.f32.mrb[1].mxu0 }
 0x4f3   : > { %v1124_v12 = vpop.f32.mrb[2].mxu0 }
 0x4f4   : > { %v1439_v13 = vpop.f32.mrb[3].mxu0  ;;  %v1130_v14 = vsel %vm1129_vm2, %v1122_v10, -1e+30 }
 0x4f5   : > { %1131 = vmax.xlane.f32.xlu0 %v1130_v14 }
 0x582   : > { %v1132_v15 = vpop.xlane.xlu0 %1131 }
 0x583   : > { %v1133_v16 = vsub.f32 %v1130_v14, %v1132_v15 }
 0x585   : > { %v1134_v17 = vmul.f32 1.442695, %v1133_v16 }
 0x587   : > { %1509 = vpow2.f32 %v1134_v17 }
 0x591   : > { %v1510_v18 = vpop.eup %1509 }
 0x592   : > { %1136 = vadd.xlane.f32.xlu0 %v1510_v18 }
 0x61f   : > { %v1137_v19 = vpop.xlane.xlu0 %1136 }
 0x620   : > { %1511 = vlog2.f32 %v1137_v19 }
 0x62a   : > { %v1512_v20 = vpop.eup %1511 }
 0x62b   : > { %v1139_v21 = vmul.f32 0.6931472, %v1512_v20 }
 0x62d   : > { %v1140_v22 = vsub.f32 %v1133_v16, %v1139_v21 }
 0x62f   : > { %1141 = vst [vmem:[%s1775_s8] sm:$0xff] %v1140_v22 }
 0x630 PF: > { %s18_s29 = sadd.s32 1, %s1535_s29   ;;  %s1776_s27 = smov %s1531_s28 }
 0x631   : > { %p15_p7 = scmp.ge.s32.totalorder %s18_s29, 4   ;;  %s1777_s28 = smov %s1779_s30 }
 0x633   :  { %17 = sbr.rel (!%p15_p7) target bundleno = 2 (0x2), region = 97 }

</bundles_post_ra>
